<compile_context>
chip_gen: v7x
topology: tpu7x:2x2x1
jax: 0.10.0
libtpu: 0.0.40
codegen_flags: <defaults>
</compile_context>

<pallas_src>
import functools

import jax
import jax.numpy as jnp
from jax.experimental import pallas as pl
from jax.experimental.pallas import tpu as pltpu


# ---------------------------------------------------------------------------
# Kernel: sequence-tiled mean pool (MXU) -> proj Linear(H,256) -> out Linear(256,3)
# Grid: (B, n_seq_tiles); batch axis "parallel", sequence axis "arbitrary".
# ---------------------------------------------------------------------------
def _audio_head_kernel(
    hid_ref,                 # (1, S_tile, H)  activation tile for one batch row
    wp_ref, bp_ref,          # (H, P) bf16, (1, P) f32      proj layer
    wo_ref, bo_ref,          # (P, O_pad) bf16, (1, O_pad)  out layer (lane-padded)
    out_ref,                 # (1, 1, O_pad)   logits (padded; resident across k)
    emb_ref,                 # (1, 1, P)       256-d embedding (resident across k)
    acc_ref,                 # (1, H) f32 scratch: running sum over the sequence
    *,
    inv_seq_len,             # static 1 / true_sequence_length
):
    k = pl.program_id(1)

    @pl.when(k == 0)
    def _init():
        acc_ref[...] = jnp.zeros_like(acc_ref)

    # MXU-based per-tile sequence sum: ones(1, S_tile) @ tile(S_tile, H), f32
    # accumulate. bf16 tiles feed the MXU natively; no VPU cast/add chain.
    tile = hid_ref[0]                                           # (S_tile, H)
    ones = jnp.ones((1, tile.shape[0]), dtype=tile.dtype)
    acc_ref[...] += jnp.dot(ones, tile, preferred_element_type=jnp.float32)

    @pl.when(k == pl.num_programs(1) - 1)
    def _finalize():
        pooled = acc_ref[...] * inv_seq_len                     # (1, H) mean pool
        # bf16 weights promote to f32 inside the dot; accumulation stays f32.
        proj = (
            jnp.dot(pooled, wp_ref[...], preferred_element_type=jnp.float32)
            + bp_ref[...]
        )                                                       # (1, P)
        emb_ref[...] = proj.astype(emb_ref.dtype).reshape(emb_ref.shape)
        logits = (
            jnp.dot(proj, wo_ref[...], preferred_element_type=jnp.float32)
            + bo_ref[...]
        )                                                       # (1, O_pad)
        out_ref[...] = logits.astype(out_ref.dtype).reshape(out_ref.shape)


# ---------------------------------------------------------------------------
# Wrapper
# ---------------------------------------------------------------------------
def audio_forward(hidden_state, params, *, return_embeddings=False, seq_tile=512):
    """Pallas forward for AudioModel's head (mean-pool + proj + out layer).

    hidden_state: (B, S, H) Hubert last_hidden_state (bf16 preferred, f32 ok).
    """
    B, S, H = hidden_state.shape
    P = params["w_proj"].shape[1]
    O_pad = params["w_out_padded"].shape[1]
    out_dim = params["out_dim"]

    # Sublane multiple depends on activation dtype: f32 -> 8, bf16 -> 16, i8 -> 32.
    itemsize = hidden_state.dtype.itemsize
    sub = max(8, 32 // itemsize)
    seq_tile = max(sub, (seq_tile // sub) * sub)
    seq_tile = min(seq_tile, pl.cdiv(S, sub) * sub)   # don't over-pad short sequences
    s_pad = pl.cdiv(S, seq_tile) * seq_tile
    if s_pad != S:
        # Zero rows do not change the running sum; the mean divides by the true S.
        hidden_state = jnp.pad(hidden_state, ((0, 0), (0, s_pad - S), (0, 0)))
    grid = (B, s_pad // seq_tile)

    kernel = functools.partial(_audio_head_kernel, inv_seq_len=float(1.0 / S))

    weight_bytes = sum(
        int(params[k].size) * params[k].dtype.itemsize
        for k in ("w_proj", "b_proj", "w_out_padded", "b_out_padded")
    )
    cost = pl.CostEstimate(
        flops=2 * B * s_pad * H + 2 * B * H * P + 2 * B * P * O_pad,
        transcendentals=0,
        bytes_accessed=int(B * s_pad * H * itemsize) + weight_bytes
        + 4 * B * (O_pad + P),
    )

    grid_spec = pltpu.PrefetchScalarGridSpec(
        num_scalar_prefetch=0,
        grid=grid,
        in_specs=[
            pl.BlockSpec((1, seq_tile, H), lambda b, k: (b, k, 0)),  # activations
            pl.BlockSpec((H, P), lambda b, k: (0, 0)),               # weights: resident
            pl.BlockSpec((1, P), lambda b, k: (0, 0)),
            pl.BlockSpec((P, O_pad), lambda b, k: (0, 0)),
            pl.BlockSpec((1, O_pad), lambda b, k: (0, 0)),
        ],
        out_specs=[
            pl.BlockSpec((1, 1, O_pad), lambda b, k: (b, 0, 0)),     # logits (padded)
            pl.BlockSpec((1, 1, P), lambda b, k: (b, 0, 0)),         # 256-d embedding
        ],
        scratch_shapes=[pltpu.VMEM((1, H), jnp.float32)],            # running-sum acc
    )

    logits_padded, emb = pl.pallas_call(
        kernel,
        out_shape=(
            jax.ShapeDtypeStruct((B, 1, O_pad), jnp.float32),
            jax.ShapeDtypeStruct((B, 1, P), jnp.float32),
        ),
        grid_spec=grid_spec,
        compiler_params=pltpu.CompilerParams(
            # batch axis -> both v7x TensorCores; sequence axis is a reduction.
            dimension_semantics=("parallel", "arbitrary"),
            vmem_limit_bytes=32 * 1024 * 1024,
        ),
        cost_estimate=cost,
    )(
        hidden_state,
        params["w_proj"], params["b_proj"],
        params["w_out_padded"], params["b_out_padded"],
    )

    if return_embeddings:
        return emb[:, 0, :]
    return logits_padded[:, 0, :out_dim]


# ---------------------------------------------------------------------------
# Pure-JAX reference (mirrors the PyTorch forward semantics; f32 math).
# ---------------------------------------------------------------------------
def audio_reference(hidden_state, params, *, return_embeddings=False):
    pooled = hidden_state.astype(jnp.float32).mean(axis=1)
    proj = pooled @ params["w_proj"].astype(jnp.float32) + params["b_proj"][0]
    if return_embeddings:
        return proj
    return proj @ params["w_out"].astype(jnp.float32) + params["b_out"][0]


# ---------------------------------------------------------------------------
# Deterministic parameter construction (scaled-down hidden size for the demo).
# ---------------------------------------------------------------------------
def make_params(key, hidden_size, proj_dim=256, out_dim=3, out_pad=128):
    keys = jax.random.split(key, 4)
    s = 0.05

    def w(k, shape):
        return (s * jax.random.normal(k, shape)).astype(jnp.float32)

    # Matmul weights in bf16 (halves resident weight DMA, native MXU input dtype);
    # biases stay f32 (tiny, exact add).
    w_proj = w(keys[0], (hidden_size, proj_dim)).astype(jnp.bfloat16)
    b_proj = w(keys[1], (1, proj_dim))
    w_out = w(keys[2], (proj_dim, out_dim)).astype(jnp.bfloat16)
    b_out = w(keys[3], (1, out_dim))

    # Lane-pad the 3-wide out layer to 128 columns (zero columns, sliced in wrapper)
    # so the final MXU op / store is lane-dense rather than a masked vst.
    w_out_padded = (
        jnp.zeros((proj_dim, out_pad), jnp.bfloat16).at[:, :out_dim].set(w_out)
    )
    b_out_padded = jnp.zeros((1, out_pad), jnp.float32).at[:, :out_dim].set(b_out)

    return {
        "w_proj": w_proj, "b_proj": b_proj,
        "w_out": w_out, "b_out": b_out,
        "w_out_padded": w_out_padded, "b_out_padded": b_out_padded,
        "out_dim": out_dim,
    }


if __name__ == "__main__":
    # Small demo shapes consistent with the module (real Hubert: H=768, S~1500).
    B, S, H = 2, 48, 64

    key = jax.random.PRNGKey(0)
    k_h, k_p = jax.random.split(key)

    # Hubert last_hidden_state stand-in (see TODO(synk) at top), in its natural
    # bf16 output dtype (halves the dominant HBM stream).
    hidden_state = (
        jax.random.normal(k_h, (B, S, H), dtype=jnp.float32).astype(jnp.bfloat16)
    )
    params = make_params(k_p, H)

    ref_logits = jax.block_until_ready(audio_reference(hidden_state, params))
    ref_emb = audio_reference(hidden_state, params, return_embeddings=True)

    # Default-tile path (single sequence tile per batch row at this small S).
    out = jax.block_until_ready(audio_forward(hidden_state, params))
    assert out.shape == (B, 3), out.shape
    assert jnp.allclose(out, ref_logits, atol=1e-3, rtol=1e-3), (out, ref_logits)

    # Multi-step reduction path (3 sequence tiles per batch row).
    out_small = jax.block_until_ready(audio_forward(hidden_state, params, seq_tile=16))
    assert jnp.allclose(out_small, ref_logits, atol=1e-3, rtol=1e-3), (out_small, ref_logits)

    # return_embeddings=True path.
    emb = jax.block_until_ready(
        audio_forward(hidden_state, params, return_embeddings=True, seq_tile=16)
    )
    assert emb.shape == (B, 256), emb.shape
    assert jnp.allclose(emb, ref_emb, atol=1e-3, rtol=1e-3)

    print("KERNEL_OK")
</pallas_src>

<mosaic_0001>
module attributes {stable_mosaic.version = 11 : i64} {
  func.func @_audio_head_kernel(%arg0: i32, %arg1: i32, %arg2: memref<1x48x64xbf16, #tpu.memory_space<vmem>>, %arg3: memref<64x256xbf16, #tpu.memory_space<vmem>>, %arg4: memref<1x256xf32, #tpu.memory_space<vmem>>, %arg5: memref<256x128xbf16, #tpu.memory_space<vmem>>, %arg6: memref<1x128xf32, #tpu.memory_space<vmem>>, %arg7: memref<1x1x128xf32, #tpu.memory_space<vmem>>, %arg8: memref<1x1x256xf32, #tpu.memory_space<vmem>>, %arg9: memref<1x64xf32, #tpu.memory_space<vmem>>) attributes {dimension_semantics = [#tpu.dimension_semantics<parallel>, #tpu.dimension_semantics<arbitrary>], iteration_bounds = array<i64: 2, 1>, scalar_prefetch = 0 : i64, scratch_operands = 1 : i64, tpu.core_type = #tpu.core_type<tc>, window_params = [{transform_indices = @transform_0, window_bounds = array<i64: 1, 48, 64>}, {pipeline_mode = #tpu.pipeline_mode<synchronous>, transform_indices = @transform_1, window_bounds = array<i64: 64, 256>}, {pipeline_mode = #tpu.pipeline_mode<synchronous>, transform_indices = @transform_2, window_bounds = array<i64: 1, 256>}, {pipeline_mode = #tpu.pipeline_mode<synchronous>, transform_indices = @transform_3, window_bounds = array<i64: 256, 128>}, {pipeline_mode = #tpu.pipeline_mode<synchronous>, transform_indices = @transform_4, window_bounds = array<i64: 1, 128>}, {transform_indices = @transform_5, window_bounds = array<i64: 1, 1, 128>}, {transform_indices = @transform_6, window_bounds = array<i64: 1, 1, 256>}]} {
    %c0_i32 = arith.constant 0 : i32
    %0 = arith.cmpi eq, %arg1, %c0_i32 : i32
    %1 = arith.extui %0 : i1 to i32
    %c0_i32_0 = arith.constant 0 : i32
    %2 = arith.cmpi ne, %1, %c0_i32_0 : i32
    scf.if %2 {
      %cst_10 = arith.constant 0.000000e+00 : f32
      %13 = vector.broadcast %cst_10 : f32 to vector<1x64xf32>
      %c0_11 = arith.constant 0 : index
      %c0_12 = arith.constant 0 : index
      %14 = vector.load %arg9[%c0_11, %c0_12] : memref<1x64xf32, #tpu.memory_space<vmem>>, vector<1x64xf32>
      tpu.vector_store %arg9[%c0_11, %c0_12], %13 {strides = array<i32>} : memref<1x64xf32, #tpu.memory_space<vmem>>, vector<1x64xf32>,
    } else {
    }
    %c0 = arith.constant 0 : index
    %c0_1 = arith.constant 0 : index
    %c0_2 = arith.constant 0 : index
    %3 = vector.load %arg2[%c0, %c0_1, %c0_2] : memref<1x48x64xbf16, #tpu.memory_space<vmem>>, vector<1x48x64xbf16>
    %4 = vector.shape_cast %3 : vector<1x48x64xbf16> to vector<48x64xbf16>
    %cst = arith.constant 1.000000e+00 : bf16
    %5 = vector.broadcast %cst : bf16 to vector<1x48xbf16>
    %c0_3 = arith.constant 0 : index
    %c0_4 = arith.constant 0 : index
    %6 = vector.load %arg9[%c0_3, %c0_4] : memref<1x64xf32, #tpu.memory_space<vmem>>, vector<1x64xf32>
    %cst_5 = arith.constant dense<0.000000e+00> : vector<1x64xf32>
    %7 = tpu.matmul %5, %4, %cst_5 {dimension_numbers = #tpu.dot_dimension_numbers<[1], [0], [0], [1], [0, 0, 1, 1], [], []>} : vector<1x48xbf16>, vector<48x64xbf16>, vector<1x64xf32> -> vector<1x64xf32>
    %8 = arith.addf %6, %7 : vector<1x64xf32>
    %c0_6 = arith.constant 0 : index
    %c0_7 = arith.constant 0 : index
    %9 = vector.load %arg9[%c0_6, %c0_7] : memref<1x64xf32, #tpu.memory_space<vmem>>, vector<1x64xf32>
    tpu.vector_store %arg9[%c0_6, %c0_7], %8 {strides = array<i32>} : memref<1x64xf32, #tpu.memory_space<vmem>>, vector<1x64xf32>,
    %c0_i32_8 = arith.constant 0 : i32
    %10 = arith.cmpi eq, %arg1, %c0_i32_8 : i32
    %11 = arith.extui %10 : i1 to i32
    %c0_i32_9 = arith.constant 0 : i32
    %12 = arith.cmpi ne, %11, %c0_i32_9 : i32
    scf.if %12 {
      %c0_10 = arith.constant 0 : index
      %c0_11 = arith.constant 0 : index
      %13 = vector.load %arg9[%c0_10, %c0_11] : memref<1x64xf32, #tpu.memory_space<vmem>>, vector<1x64xf32>
      %cst_12 = arith.constant 0.020833334 : f32
      %14 = vector.broadcast %cst_12 : f32 to vector<1x64xf32>
      %15 = arith.mulf %13, %14 : vector<1x64xf32>
      %c0_13 = arith.constant 0 : index
      %c0_14 = arith.constant 0 : index
      %16 = vector.load %arg3[%c0_13, %c0_14] : memref<64x256xbf16, #tpu.memory_space<vmem>>, vector<64x256xbf16>
      %cst_15 = arith.constant dense<0.000000e+00> : vector<1x256xf32>
      %17 = tpu.matmul %15, %16, %cst_15 {dimension_numbers = #tpu.dot_dimension_numbers<[1], [0], [0], [1], [0, 0, 1, 1], [], []>} : vector<1x64xf32>, vector<64x256xbf16>, vector<1x256xf32> -> vector<1x256xf32>
      %c0_16 = arith.constant 0 : index
      %c0_17 = arith.constant 0 : index
      %18 = vector.load %arg4[%c0_16, %c0_17] : memref<1x256xf32, #tpu.memory_space<vmem>>, vector<1x256xf32>
      %19 = arith.addf %17, %18 : vector<1x256xf32>
      %20 = vector.shape_cast %19 : vector<1x256xf32> to vector<1x1x256xf32>
      %c0_18 = arith.constant 0 : index
      %c0_19 = arith.constant 0 : index
      %c0_20 = arith.constant 0 : index
      %21 = vector.load %arg8[%c0_18, %c0_19, %c0_20] : memref<1x1x256xf32, #tpu.memory_space<vmem>>, vector<1x1x256xf32>
      tpu.vector_store %arg8[%c0_18, %c0_19, %c0_20], %20 {strides = array<i32>} : memref<1x1x256xf32, #tpu.memory_space<vmem>>, vector<1x1x256xf32>,
      %c0_21 = arith.constant 0 : index
      %c0_22 = arith.constant 0 : index
      %22 = vector.load %arg5[%c0_21, %c0_22] : memref<256x128xbf16, #tpu.memory_space<vmem>>, vector<256x128xbf16>
      %cst_23 = arith.constant dense<0.000000e+00> : vector<1x128xf32>
      %23 = tpu.matmul %19, %22, %cst_23 {dimension_numbers = #tpu.dot_dimension_numbers<[1], [0], [0], [1], [0, 0, 1, 1], [], []>} : vector<1x256xf32>, vector<256x128xbf16>, vector<1x128xf32> -> vector<1x128xf32>
      %c0_24 = arith.constant 0 : index
      %c0_25 = arith.constant 0 : index
      %24 = vector.load %arg6[%c0_24, %c0_25] : memref<1x128xf32, #tpu.memory_space<vmem>>, vector<1x128xf32>
      %25 = arith.addf %23, %24 : vector<1x128xf32>
      %26 = vector.shape_cast %25 : vector<1x128xf32> to vector<1x1x128xf32>
      %c0_26 = arith.constant 0 : index
      %c0_27 = arith.constant 0 : index
      %c0_28 = arith.constant 0 : index
      %27 = vector.load %arg7[%c0_26, %c0_27, %c0_28] : memref<1x1x128xf32, #tpu.memory_space<vmem>>, vector<1x1x128xf32>
      tpu.vector_store %arg7[%c0_26, %c0_27, %c0_28], %26 {strides = array<i32>} : memref<1x1x128xf32, #tpu.memory_space<vmem>>, vector<1x1x128xf32>,
    } else {
    }
    return
  }
  func.func @transform_0(%arg0: i32, %arg1: i32) -> (i32, i32, i32) {
    %c0_i32 = arith.constant 0 : i32
    %c0_i32_0 = arith.constant 0 : i32
    return %arg0, %arg1, %c0_i32 : i32, i32, i32
  }
  func.func @transform_1(%arg0: i32, %arg1: i32) -> (i32, i32) {
    %c0_i32 = arith.constant 0 : i32
    %c0_i32_0 = arith.constant 0 : i32
    %c0_i32_1 = arith.constant 0 : i32
    return %c0_i32, %c0_i32_0 : i32, i32
  }
  func.func @transform_2(%arg0: i32, %arg1: i32) -> (i32, i32) {
    %c0_i32 = arith.constant 0 : i32
    %c0_i32_0 = arith.constant 0 : i32
    %c0_i32_1 = arith.constant 0 : i32
    return %c0_i32, %c0_i32_0 : i32, i32
  }
  func.func @transform_3(%arg0: i32, %arg1: i32) -> (i32, i32) {
    %c0_i32 = arith.constant 0 : i32
    %c0_i32_0 = arith.constant 0 : i32
    %c0_i32_1 = arith.constant 0 : i32
    return %c0_i32, %c0_i32_0 : i32, i32
  }
  func.func @transform_4(%arg0: i32, %arg1: i32) -> (i32, i32) {
    %c0_i32 = arith.constant 0 : i32
    %c0_i32_0 = arith.constant 0 : i32
    %c0_i32_1 = arith.constant 0 : i32
    return %c0_i32, %c0_i32_0 : i32, i32
  }
  func.func @transform_5(%arg0: i32, %arg1: i32) -> (i32, i32, i32) {
    %c0_i32 = arith.constant 0 : i32
    %c0_i32_0 = arith.constant 0 : i32
    %c0_i32_1 = arith.constant 0 : i32
    return %arg0, %c0_i32, %c0_i32_0 : i32, i32, i32
  }
  func.func @transform_6(%arg0: i32, %arg1: i32) -> (i32, i32, i32) {
    %c0_i32 = arith.constant 0 : i32
    %c0_i32_0 = arith.constant 0 : i32
    %c0_i32_1 = arith.constant 0 : i32
    return %arg0, %c0_i32, %c0_i32_0 : i32, i32, i32
  }
}

</mosaic_0001>

<bundles_post_ra>
// kernel: tpu_custom_call.1
= control target key start
LH: loop header
LB: loop body
LE: loop exit
PB: predicated region body
PF: predicated region fallthrough
CT: control target
= control target key end

     0   :  { %12 = vsyncpa [#allocation4], 0  ;;  %s1620_s0 = inlined_call_operand.hbm [shape: bf16[2,48,64], index: 0, kind: input, shape index: {}]   ;;  %s1621_s1 = inlined_call_operand.hbm [shape: bf16[64,256], index: 1, kind: input, shape index: {}]   ;;  %s1622_s2 = inlined_call_operand.vmem [shape: f32[1,256], index: 2, kind: input, shape index: {}]   ;;  %s1623_s3 = inlined_call_operand.hbm [shape: bf16[256,128], index: 3, kind: input, shape index: {}]   ;;  %s1624_s4 = inlined_call_operand.vmem [shape: f32[1,128], index: 4, kind: input, shape index: {}]   ;;  %s1625_s5 = inlined_call_operand.hbm [shape: f32[2,1,128], index: 5, kind: output, shape index: {0}]   ;;  %s1626_s6 = inlined_call_operand.hbm [shape: f32[2,1,256], index: 6, kind: output, shape index: {1}]  }
   0x1   :  { %14 = vsyncpa [#allocation4 + $0x1], 0 }
   0x2   :  { %15 = vsyncpa [#allocation7], 0 }
   0x3   :  { %16 = vsyncpa [#allocation5], 0 }
   0x4   :  { %18 = vsyncpa [#allocation5 + $0x1], 0 }
   0x5   :  { %19 = vsyncpa [#allocation11], 0 }
   0x6   :  { %21 = vsyncpa [#allocation11 + $0x1], 0  ;;  %s1329_s21 = smov 0   ;;  %s1331_s22 = smov 0  }
   0x7   :  { %s1333_s23 = smov 0   ;;  %s1335_s24 = smov 0  }
   0x8   :  { %s1337_s25 = smov 0   ;;  %s1339_s26 = smov 0  }
   0x9 LB: > { %s865_s27 = sadd.s32 4294967295, %s1279_s26   ;;  %s866_s28 = sadd.s32 4294967294, %s1279_s26   ;;  %s1279_s26 = sphi %s1339_s26, %s27_s26   ;;  %s1275_s25 = sphi %s1337_s25, %s1655_s25   ;;  %s1271_s24 = sphi %s1335_s24, %s1654_s24   ;;  %s1267_s23 = sphi %s1333_s23, %s1653_s23   ;;  %s1263_s22 = sphi %s1331_s22, %s1652_s22   ;;  %s1259_s21 = sphi %s1329_s21, %s1651_s21  }
   0xa   : > { %p61_p0 = scmp.ne.s32.totalorder %s1263_s22, %s1259_s21  ;;  %p1363_p1 = scmp.eq.s32.totalorder %s865_s27, 0 }
   0xb   : > { %p1367_p2 = scmp.eq.s32.totalorder %s865_s27, 1  ;;  %p175_p3 = scmp.eq.s32.totalorder %s866_s28, 1 }
   0xc   : > { %s1634_s29 = scalar_select %p1363_p1, 1, 0 }
   0xd   : > { %p1373_p4 = por %p1363_p1, %p61_p0  ;;  %p867_p5 = scmp.ge.s32.totalorder %s1279_s26, 1 }
   0xe   : > { %p1378_p6 = por %p175_p3, %p61_p0  ;;  %p208_p7 = scmp.lt.s32.totalorder %s1279_s26, 3 }
   0xf   : > { %s1636_s7 = scalar_select %p1373_p4, 1, 0 }
  0x10   : > { %s1637_s8 = scalar_select %p1378_p6, 1, 0 }
  0x11   : > { %p1383_p8 = pnand %p867_p5, %p208_p7  ;;  %s1281_s10 = smov [#allocation6]  }
  0x12   : > { %1638 = sst [smem:[#allocation16_spill]] %s1637_s8  ;;  %s220_s11 = sshll.u32 %s1281_s10, 4  ;;  %s1387_s11 = int_to_ptr.vmem [resolvable:$true] %s220_s11 }
  0x13   : > { %p962_p9 = pneg %p1383_p8  ;;  %s1282_s13 = smov [#allocation8]  }
  0x14   : > { %s236_s14 = sshll.u32 %s1282_s13, 4  ;;  %s1075_s17 = scalar_lea.hbm %s1621_s1, 1024  ;;  %s1398_s14 = int_to_ptr.vmem [resolvable:$true] %s236_s14 }
  0x15   : > { %p1394_p11 = pnand %p962_p9, %p1363_p1  ;;  %p1076_p12 = scmp.ne.s32.totalorder %s1621_s1, %s1075_s17 }
  0x16   : > { %p1082_p5 = scmp.lt.u32.totalorder %s1075_s17, %s1621_s1 }
  0x17   : > { %p1077_p13 = pneg %p1394_p11 }
  0x19   : > { %p1078_p0 = pnand %p1077_p13, %p1076_p12 }
  0x1b   : > { %p1079_p3 = pneg %p1078_p0 }
  0x1d   : > { %p1084_p7 = pnand %p1082_p5, %p1079_p3 }
  0x1f   : > { %1087 = shalt.err (!%p1084_p7)
}
  0x20   : > { %s1088_s28 = scalar_lea.vmem %s1387_s11, 1024  ;;  %p1096_p1 = scmp.lt.s32.totalorder %s1387_s11, %s1387_s11 }
  0x21   : > { %p1089_p9 = scmp.ne.s32.totalorder %s1387_s11, %s1088_s28  ;;  %p1097_p12 = scmp.lt.s32.totalorder %s1088_s28, %s1088_s28 }
  0x23   : > { %p1091_p10 = pnand %p1089_p9, %p1077_p13  ;;  %p1098_p0 = por %p1097_p12, %p1096_p1 }
  0x25   : > { %p1092_p6 = pneg %p1091_p10 }
  0x27   : > { %p1099_p4 = pnand %p1098_p0, %p1092_p6 }
  0x29   : > { %1102 = shalt.err (!%p1099_p4)
}
  0x2a   : > { %s1283_s10 = smov 128   ;;  %s1284_s13 = smov 8  }
  0x2b   : > { %965 = dma.hbm_to_vmem [thread:$0]  (!%p1394_p11), %s1621_s1, 1024, %s1387_s11, [#allocation7], %s1283_s10, %s1283_s10, %s1284_s13  }
  0x2c   : > { %s1103_s19 = scalar_lea.hbm %s1623_s3, 2048 }
  0x2d   : > { %p1104_p1 = scmp.ne.s32.totalorder %s1623_s3, %s1103_s19  ;;  %p1110_p10 = scmp.lt.u32.totalorder %s1103_s19, %s1623_s3 }
  0x2f   : > { %p1106_p4 = pnand %p1104_p1, %p1077_p13 }
  0x31   : > { %p1107_p6 = pneg %p1106_p4 }
  0x33   : > { %p1112_p3 = pnand %p1110_p10, %p1107_p6 }
  0x35   : > { %1115 = shalt.err (!%p1112_p3)
}
  0x36   : > { %s1116_s11 = scalar_lea.vmem %s1398_s14, 2048  ;;  %p1124_p12 = scmp.lt.s32.totalorder %s1398_s14, %s1398_s14 }
  0x37   : > { %p1117_p5 = scmp.ne.s32.totalorder %s1398_s14, %s1116_s11  ;;  %p1125_p0 = scmp.lt.s32.totalorder %s1116_s11, %s1116_s11 }
  0x39   : > { %p1119_p7 = pnand %p1117_p5, %p1077_p13  ;;  %p1126_p1 = por %p1125_p0, %p1124_p12 }
  0x3b   : > { %p1120_p9 = pneg %p1119_p7 }
  0x3d   : > { %p1127_p4 = pnand %p1126_p1, %p1120_p9 }
  0x3f   : > { %1130 = shalt.err (!%p1127_p4)
}
  0x40   : > { %s1631_s8 = smov 64   ;;  %s1632_s10 = smov 4  }
  0x41   : > { %968 = dma.hbm_to_vmem [thread:$0]  (!%p1394_p11), %s1623_s3, 2048, %s1398_s14, [#allocation7], %s1631_s8, %s1631_s8, %s1632_s10  }
  0x42   : > { %s39_s16 = sadd.s32 1, %s1275_s25  ;;  %s48_s17 = sadd.s32 1, %s1267_s23 }
  0x43   : > { %p41_p13 = scmp.ge.s32.totalorder %s39_s16, 2  ;;  %p55_p6 = scmp.ne.s32.totalorder %s1267_s23, %s1263_s22 }
  0x44   : > { %p56_p10 = scmp.eq.s32.totalorder %s1279_s26, 0  ;;  %p982_p3 = scmp.lt.s32.totalorder %s1279_s26, 2 }
  0x45   : > { %s1657_s16 = smov (%p41_p13, %s39_s16), 0  ;;  %p1465_p7 = por %p1367_p2, %p55_p6 }
  0x46   : > { %p57_p5 = por %p56_p10, %p55_p6  ;;  %s43_s18 = ssub.s32 %s1275_s25, %s1657_s16 }
  0x47   : > { %s1641_s12 = scalar_select %p1465_p7, 1, 0 }
  0x48   : > { %s253_s19 = sand.u32 1, %s1267_s23   ;;  %p46_p9 = scmp.eq.s32.totalorder %s43_s18, 0 }
  0x49   : > { %s945_s14 = smul.u32 24, %s253_s19  ;;  %p1472_p11 = pnand %p982_p3, %p57_p5 }
  0x4a   : > { %s1477_s27 = scalar_select %p46_p9, %s1267_s23, %s48_s17  }
  0x4b   : > { %s946_s28 = smul.u32 384, %s1275_s25  ;;  %s257_s11 = scalar_lea.vmem [#allocation3], %s945_s14 }
  0x4c   : > { %s266_s13 = sshll.u32 %s257_s11, 4  ;;  %s1487_s18 = scalar_lea.sflag [#allocation4], %s253_s19  ;;  %s1485_s13 = int_to_ptr.vmem [resolvable:$true] %s266_s13 }
  0x4d   : > { %s1483_s8 = scalar_lea.hbm %s1620_s0, %s946_s28  ;;  %p1133_p12 = pneg %p1472_p11 }
  0x4e   : > { %s1131_s10 = scalar_lea.hbm %s1483_s8, 384  ;;  %s1136_s28 = scalar_lea.hbm %s1620_s0, 768 }
  0x4f   : > { %p1132_p2 = scmp.ne.s32.totalorder %s1483_s8, %s1131_s10  ;;  %p1137_p4 = scmp.lt.u32.totalorder %s1483_s8, %s1620_s0 }
  0x50   : > { %p1138_p13 = scmp.lt.u32.totalorder %s1136_s28, %s1131_s10  ;;  %p1140_p10 = scmp.lt.u32.totalorder %s1131_s10, %s1483_s8 }
  0x51   : > { %p1134_p0 = pnand %p1133_p12, %p1132_p2 }
  0x52   : > { %p1139_p6 = por %p1138_p13, %p1137_p4 }
  0x53   : > { %p1135_p1 = pneg %p1134_p0 }
  0x54   : > { %p1141_p3 = por %p1140_p10, %p1139_p6 }
  0x56   : > { %p1142_p5 = pnand %p1141_p3, %p1135_p1 }
  0x58   : > { %1145 = shalt.err (!%p1142_p5)
}
  0x59   : > { %s1146_s19 = scalar_lea.vmem %s1485_s13, 384  ;;  %s1287_s15 = smov [#allocation3]  }
  0x5a   : > { %p1147_p9 = scmp.ne.s32.totalorder %s1485_s13, %s1146_s19  ;;  %s1151_s17 = sshll.u32 %s1287_s15, 4  ;;  %s1152_s17 = int_to_ptr.vmem [resolvable:$false] %s1151_s17 }
  0x5b   : > { %s1153_s14 = scalar_lea.vmem %s1152_s17, 768  ;;  %p1154_p7 = scmp.lt.s32.totalorder %s1485_s13, %s1152_s17 }
  0x5c   : > { %p1149_p2 = pnand %p1147_p9, %p1133_p12  ;;  %p1155_p4 = scmp.lt.s32.totalorder %s1153_s14, %s1146_s19 }
  0x5e   : > { %p1150_p0 = pneg %p1149_p2  ;;  %p1156_p13 = por %p1155_p4, %p1154_p7 }
  0x60   : > { %p1157_p6 = pnand %p1156_p13, %p1150_p0 }
  0x62   : > { %1160 = shalt.err (!%p1157_p6)
}
  0x63   : > { %s1643_s10 = smov 4   ;;  %s1644_s28 = smov 64  }
  0x64   : > { %972 = dma.hbm_to_vmem [thread:$0]  (!%p1472_p11), %s1483_s8, 384, %s1485_s13, %s1487_s18, %s1644_s28, %s1644_s28, %s1643_s10  }
  0x65   : > { %278 = sbr.rel (%p1383_p8) target bundleno = 796 (0x31c), region = 40  ;;  %s1521_s11 = sand.u32 (!%p1383_p8), 1, %s1263_s22  }
  0x66   : > { %s947_s30 = smul.u32 (!%p1383_p8), 24, %s1521_s11  ;;  %s281_s19 = scalar_lea.sflag (!%p1383_p8), [#allocation4], %s1521_s11 }
  0x67   : > { %p1645_p7 = scmp.ne.s32.totalorder (!%p1383_p8), %s1636_s7, 0 }
  0x68   : > { %s284_s15 = scalar_lea.vmem (!%p1383_p8), [#allocation3], %s947_s30 }
  0x6c   : > { %1242 = dma.done.wait (%p1645_p7), %s281_s19, 384  }
  0x6d   : > { %1244 = vsyncadd (%p1645_p7), %s281_s19, 4294966912  ;;  %p1646_p12 = scmp.ne.s32.totalorder %s1634_s29, 0 }
  0x6f   : > { %1246 = dma.done.wait (%p1646_p12), [#allocation7], 3072  }
  0x70   : > { %1248 = vsyncadd (%p1646_p12), [#allocation7], 4294964224  ;;  %vm332_vm0 = vcmask 516096   ;;  %v1288_v0 = vmov 0.0   ;;  %vm1289_vm1 = vmmov 0   ;;  %v1044_v1 = vld [vmem:[%s284_s15] sm:$0xff]   ;;  %v461_v37 = vlaneseq }
  0x71   : > { %935 = vmatprep.subr.bf16.mxu1 %v1288_v0  ;;  %941 = vmatprep.mubr.msk.bf16.mxu1 %vm1289_vm1, %v1288_v0  ;;  %333 = vst.msk [vmem:[#allocation2] sm:$0x1] %vm332_vm0, %v1288_v0  ;;  %v1045_v2 = vld [vmem:[%s284_s15 + $0x8] sm:$0xff]   ;;  %v1046_v3 = vld [vmem:[%s284_s15 + $0x10] sm:$0xff]   ;;  %vm359_vm2 = vcmask 392192   ;;  %v1061_v15 = vld [vmem:[#allocation8 + $0x48] sm:$0xff]  }
  0x72   : > { %936 = vmatpush3.bf16.msra.mxu1 %v1044_v1  ;;  %v1049_v4 = vld [vmem:[#allocation6 + $0x4] ss:$8 sps:$4 sm:$0xff]   ;;  %v1047_v5 = vld [vmem:[#allocation6] ss:$8 sps:$4 sm:$0xff]   ;;  %v1290_v6 = vmov 1065369472  }
  0x73   : > { %937 = vmatprep.subr.bf16.mxu1 %v1288_v0  ;;  %v1052_v7 = vld [vmem:[#allocation6 + $0x14] ss:$8 sps:$4 sm:$0xff]   ;;  %v1050_v8 = vld [vmem:[#allocation6 + $0x10] ss:$8 sps:$4 sm:$0xff]   ;;  %v1053_v9 = vld [vmem:[#allocation6 + $0x20] ss:$8 sps:$4 sm:$0xff]  }
  0x74   : > { %v1055_v10 = vld [vmem:[#allocation6 + $0x24] ss:$8 sps:$4 sm:$0xff]   ;;  %v1058_v11 = vld [vmem:[#allocation6 + $0x34] ss:$8 sps:$4 sm:$0xff]   ;;  %v1056_v12 = vld [vmem:[#allocation6 + $0x30] ss:$8 sps:$4 sm:$0xff]  }
  0x75   : > { %v1059_v13 = vld [vmem:[#allocation8 + $0x40] sm:$0xff]   ;;  %v1062_v16 = vld [vmem:[#allocation8 + $0x8] sm:$0xff]   ;;  %v1063_v17 = vld [vmem:[#allocation8 + $0x50] sm:$0xff]   ;;  %vm471_vm3 = vcmask 523264   ;;  %v462_v38 = vshrl.u32 %v461_v37, 7  ;;  %s875_s9 = sshll.u32 %s1521_s11, 1 }
  0x76   : > { %938 = vmatpush3.bf16.msra.mxu1 %v1045_v2  ;;  %v1060_v14 = vld [vmem:[#allocation8] sm:$0xff]   ;;  %916 = vmatprep.subr.bf16.mxu0 %v1059_v13  ;;  %v1064_v18 = vld [vmem:[#allocation8 + $0x10] sm:$0xff]   ;;  %v1065_v19 = vld [vmem:[#allocation8 + $0x58] sm:$0xff]   ;;  %v1291_v42 = vmov 1966171168   ;;  %vm534_vm4 = vcmp.lt.s32.totalorder %v461_v37, 256 }
  0x77   : > { %939 = vmatprep.subr.bf16.mxu1 %v1288_v0  ;;  %917 = vmatpush3.bf16.msra.mxu0 %v1060_v14  ;;  %v1066_v20 = vld [vmem:[#allocation8 + $0x18] sm:$0xff]   ;;  %v1067_v21 = vld [vmem:[#allocation8 + $0x60] sm:$0xff]   ;;  %v1069_v23 = vld [vmem:[#allocation8 + $0x68] sm:$0xff]   ;;  %v463_v39 = vsub.s32 0, %v462_v38  ;;  %v467_v41 = vsub.s32 1, %v462_v38  ;;  %v518_v43 = vunpack.c.l.s4 %v1291_v42  ;;  %s324_s8 = scalar_lea.vmem [#allocation10], %s875_s9 }
  0x78   : > { %918 = vmatprep.subr.bf16.mxu0 %v1061_v15  ;;  %v1068_v22 = vld [vmem:[#allocation8 + $0x20] sm:$0xff]   ;;  %v1070_v24 = vld [vmem:[#allocation8 + $0x28] sm:$0xff]   ;;  %v1071_v25 = vld [vmem:[#allocation8 + $0x70] sm:$0xff]   ;;  %s911_s20 = sshll.u32 %s1271_s24, 5  ;;  %s737_s13 = sshll.u32 %s324_s8, 4  ;;  %s738_s13 = int_to_ptr.vmem [resolvable:$true] %s737_s13 }
  0x79   : > { %v1072_v26 = vld [vmem:[#allocation8 + $0x30] sm:$0xff]   ;;  %v340_v27 = vld [vmem:[#allocation2] sm:$0x1]  ;;  %v1073_v35 = vld [vmem:[#allocation8 + $0x78] sm:$0xff]   ;;  %v519_v46 = vunpack.c.0.s8 %v518_v43  ;;  %s1543_s14 = scalar_lea.hbm %s1626_s6, %s911_s20  ;;  %s710_s10 = scalar_lea.sflag [#allocation11], %s1521_s11 }
  0x7a   : > { %940 = vmatpush3.bf16.msra.mxu1 %v1046_v3  ;;  %v1074_v36 = vld [vmem:[#allocation8 + $0x38] sm:$0xff]   ;;  %v419_v40 = vld [vmem:[%s1622_s2] sm:$0x3]  ;;  %s1161_s28 = scalar_lea.vmem %s738_s13, 32  ;;  %p1647_p11 = scmp.ne.s32.totalorder %s1641_s12, 0 }
  0x7b   : > { %475 = vmatprep.subr.bf16.mxu1 %v1049_v4  ;;  %919 = vmatpush3.bf16.msra.mxu0 %v1062_v16  ;;  %v464_v44 = vrot.slane %v419_v40, %v463_v39  ;;  %v468_v45 = vrot.slane %v419_v40, %v467_v41  ;;  %v522_v51 = vsub.s32 %v519_v46, %v462_v38  ;;  %p1162_p8 = scmp.ne.s32.totalorder %s738_s13, %s1161_s28  ;;  %s1292_s30 = smov [#allocation10]  }
  0x7c   : > { %920 = vmatprep.subr.bf16.mxu0 %v1063_v17  ;;  %s1165_s19 = sshll.u32 %s1292_s30, 4  ;;  %s1166_s19 = int_to_ptr.vmem [resolvable:$false] %s1165_s19 }
  0x7d   : > { %942 = vmatmul.mubr.msk.bf16.vlgmr.msra.gmra.mrb[0].mxu1 %vm359_vm2, %v1290_v6  ;;  %p1163_p1 = pnand %p1162_p8, %p1647_p11  ;;  %s1167_s15 = scalar_lea.vmem %s1166_s19, 64 }
  0x7e   : > { %476 = vmatpush1.bf16.msra.mxu1 %v1047_v5  ;;  %507 = vmatprep.mubr.f32.mxu1 %v1288_v0  ;;  %p1168_p3 = scmp.lt.s32.totalorder %s738_s13, %s1166_s19  ;;  %p1169_p5 = scmp.lt.s32.totalorder %s1167_s15, %s1161_s28 }
  0x7f   : > { %477 = vmatprep.subr.bf16.mxu1 %v1052_v7  ;;  %921 = vmatpush3.bf16.msra.mxu0 %v1064_v18  ;;  %p1164_p10 = pneg %p1163_p1 }
  0x80   : > { %922 = vmatprep.subr.bf16.mxu0 %v1065_v19  ;;  %p1170_p9 = por %p1169_p5, %p1168_p3 }
  0x82   : > { %478 = vmatpush1.bf16.msra.mxu1 %v1050_v8  ;;  %p1171_p2 = pnand %p1170_p9, %p1164_p10 }
  0x83   : > { %479 = vmatprep.subr.bf16.mxu1 %v1055_v10  ;;  %923 = vmatpush3.bf16.msra.mxu0 %v1066_v20 }
  0x84   : > { %924 = vmatprep.subr.bf16.mxu0 %v1067_v21 }
  0x86   : > { %480 = vmatpush1.bf16.msra.mxu1 %v1053_v9 }
  0x87   : > { %481 = vmatprep.subr.bf16.mxu1 %v1058_v11  ;;  %925 = vmatpush3.bf16.msra.mxu0 %v1068_v22 }
  0x88   : > { %926 = vmatprep.subr.bf16.mxu0 %v1069_v23 }
  0x8a   : > { %482 = vmatpush1.bf16.msra.mxu1 %v1056_v12 }
  0x8b   : > { %927 = vmatpush3.bf16.msra.mxu0 %v1070_v24 }
  0x8c   : > { %928 = vmatprep.subr.bf16.mxu0 %v1071_v25 }
  0x8f   : > { %929 = vmatpush3.bf16.msra.mxu0 %v1072_v26 }
  0x90   : > { %930 = vmatprep.subr.bf16.mxu0 %v1073_v35 }
  0x93   : > { %931 = vmatpush3.bf16.msra.mxu0 %v1074_v36 }
 0x150   : > { %v397_v28 = vpop.f32.mrb[0].mxu1 }
 0x151   : > { %v403_v29 = vadd.f32 %v397_v28, %v340_v27  ;;  %v943_v30 = vpop.f32.mrb[1].mxu1 }
 0x152   : > { %v400_v31 = vpop.f32.mrb[2].mxu1 }
 0x153   : > { %405 = vst.msk [vmem:[#allocation2] sm:$0x1] %vm332_vm0, %v403_v29  ;;  %v944_v32 = vpop.f32.mrb[3].mxu1 }
 0x15a   : > { %v409_v33 = vld [vmem:[#allocation2] sm:$0x1] }
 0x15b   : > { %v410_v34 = vmul.f32 0.020833334, %v409_v33 }
 0x15d   : > { %888 = vmatmul.mubr.msk.f32.vlgmr.msra.gmra.mrb[4].mxu1 %vm471_vm3, %v410_v34 }
 0x230   : > { %v509_v47 = vpop.f32.mrb[4].mxu1 }
 0x231   : > { %v510_v48 = vadd.f32 %v509_v47, %v464_v44  ;;  %v511_v49 = vpop.f32.mrb[5].mxu1 }
 0x232   : > { %v512_v50 = vadd.f32 %v511_v49, %v468_v45 }
 0x234   : > { %v516_v52 = vcombine.low %v510_v48, %v512_v50  ;;  %698 = vmatprep.mubr.f32.mxu0 %v512_v50 }
 0x235   : > { %699 = vmatmul.mubr.f32.vlgmr.msra.gmra.mrb[0].mxu0 %v510_v48 }
 0x236   : > { %v523_v53 = vrot.slane %v516_v52, %v522_v51 }
 0x238   : > { %v530_v54 = vrot.slane %v523_v53, %v522_v51 }
 0x23a   : > { %536 = vst.msk [vmem:[%s324_s8] sm:$0x3] %vm534_vm4, %v530_v54 }
 0x23b   : > { %1174 = shalt.err (!%p1171_p2)
}
 0x23c   : > { %s1175_s29 = scalar_lea.hbm %s1543_s14, 32  ;;  %s1179_s8 = scalar_lea.hbm %s1626_s6, 64 }
 0x23d   : > { %p1176_p0 = scmp.ne.s32.totalorder %s1543_s14, %s1175_s29  ;;  %p1180_p6 = scmp.lt.u32.totalorder %s1543_s14, %s1626_s6 }
 0x23e   : > { %p1181_p7 = scmp.lt.u32.totalorder %s1179_s8, %s1175_s29  ;;  %p1183_p8 = scmp.lt.u32.totalorder %s1175_s29, %s1543_s14 }
 0x23f   : > { %p1177_p4 = pnand %p1176_p0, %p1647_p11 }
 0x240   : > { %p1182_p12 = por %p1181_p7, %p1180_p6 }
 0x241   : > { %p1178_p13 = pneg %p1177_p4 }
 0x242   : > { %p1184_p1 = por %p1183_p8, %p1182_p12 }
 0x244   : > { %p1185_p10 = pnand %p1184_p1, %p1178_p13 }
 0x246   : > { %1188 = shalt.err (!%p1185_p10)
}
 0x247   : > { %959 = dma.vmem_to_hbm [thread:$0]  (%p1647_p11), %s738_s13, 32, %s1543_s14, %s710_s10   ;;  %v569_v56 = vld [vmem:[%s1624_s4] sm:$0x1] }
 0x248   : > { %s906_s30 = sshll.u32 %s1271_s24, 4  ;;  %s317_s19 = scalar_lea.vmem [#allocation9], %s1521_s11 }
 0x249   : > { %s723_s15 = sshll.u32 %s317_s19, 4  ;;  %s1571_s9 = scalar_lea.hbm %s1625_s5, %s906_s30  ;;  %s1573_s15 = int_to_ptr.vmem [resolvable:$true] %s723_s15 }
 0x24a   : > { %s706_s13 = scalar_lea.sflag [#allocation5], %s1521_s11  ;;  %s1189_s14 = scalar_lea.vmem %s1573_s15, 16 }
 0x24b   : > { %p1190_p3 = scmp.ne.s32.totalorder %s1573_s15, %s1189_s14  ;;  %s1293_s24 = smov [#allocation9]  }
 0x24c   : > { %s1193_s10 = sshll.u32 %s1293_s24, 4  ;;  %s1194_s10 = int_to_ptr.vmem [resolvable:$false] %s1193_s10 }
 0x24d   : > { %p1191_p5 = pnand %p1190_p3, %p1647_p11  ;;  %s1195_s8 = scalar_lea.vmem %s1194_s10, 32 }
 0x24e   : > { %p1196_p2 = scmp.lt.s32.totalorder %s1573_s15, %s1194_s10  ;;  %p1197_p0 = scmp.lt.s32.totalorder %s1195_s8, %s1189_s14 }
 0x24f   : > { %p1192_p9 = pneg %p1191_p5 }
 0x250   : > { %p1198_p4 = por %p1197_p0, %p1196_p2 }
 0x252   : > { %p1199_p13 = pnand %p1198_p4, %p1192_p9 }
 0x308   : > { %v932_v55 = vpop.f32.mrb[0].mxu0 }
 0x309   : > { %v933_v57 = vpop.f32.mrb[1].mxu0 }
 0x30a   : > { %v934_v58 = vadd.f32 %v933_v57, %v932_v55 }
 0x30c   : > { %v701_v59 = vadd.f32 %v934_v58, %v569_v56 }
 0x30e   : > { %704 = vst [vmem:[%s317_s19] sm:$0x1] %v701_v59 }
 0x30f   : > { %1202 = shalt.err (!%p1199_p13)
}
 0x310   : > { %s1203_s11 = scalar_lea.hbm %s1571_s9, 16  ;;  %s1207_s17 = scalar_lea.hbm %s1625_s5, 32 }
 0x311   : > { %p1204_p6 = scmp.ne.s32.totalorder %s1571_s9, %s1203_s11  ;;  %p1208_p8 = scmp.lt.u32.totalorder %s1571_s9, %s1625_s5 }
 0x312   : > { %p1209_p1 = scmp.lt.u32.totalorder %s1207_s17, %s1203_s11  ;;  %p1211_p3 = scmp.lt.u32.totalorder %s1203_s11, %s1571_s9 }
 0x313   : > { %p1205_p7 = pnand %p1204_p6, %p1647_p11 }
 0x314   : > { %p1210_p10 = por %p1209_p1, %p1208_p8 }
 0x315   : > { %p1206_p12 = pneg %p1205_p7 }
 0x316   : > { %p1212_p5 = por %p1211_p3, %p1210_p10 }
 0x318   : > { %p1213_p9 = pnand %p1212_p5, %p1206_p12 }
 0x31a   : > { %1216 = shalt.err (!%p1213_p9)
}
 0x31b   : > { %958 = dma.vmem_to_hbm [thread:$0]  (%p1647_p11), %s1573_s15, 16, %s1571_s9, %s706_s13  }
 0x31c PF: > { %s1648_s19 = sld [smem:[#allocation16_spill]]  ;;  %s749_s29 = sand.u32 1, %s1259_s21  }
 0x31d   : > { %p1650_p0 = scmp.ge.s32.totalorder %s1279_s26, 2  ;;  %s750_s7 = scalar_lea.sflag [#allocation5], %s749_s29 }
 0x322   : > { %p1649_p2 = scmp.ne.s32.totalorder %s1648_s19, 0 }
 0x324   : > { %p974_p4 = pnand %p1650_p0, %p1649_p2 }
 0x326   : > { %1250 = dma.done.wait (!%p974_p4), %s750_s7, 16  }
 0x327   : > { %1252 = vsyncadd (!%p974_p4), %s750_s7, 4294967280  ;;  %s758_s14 = scalar_lea.sflag [#allocation11], %s749_s29 }
 0x328   : > { %1254 = dma.done.wait (!%p974_p4), %s758_s14, 32  }
 0x329   : > { %1256 = vsyncadd (!%p974_p4), %s758_s14, 4294967264  ;;  %s27_s26 = sadd.s32 1, %s1279_s26   ;;  %s1651_s21 = smov %s1263_s22 }
 0x32a   : > { %p24_p13 = scmp.ge.s32.totalorder %s27_s26, 4   ;;  %s1652_s22 = smov %s1267_s23 }
 0x32b   : > { %s1653_s23 = smov %s1477_s27  ;;  %s1654_s24 = smov %s1275_s25 }
 0x32c   : > { %s1655_s25 = smov %s1657_s16  ;;  %26 = sbr.rel (!%p24_p13) target bundleno = 9 (0x9), region = 118 }
 0x333   :  { %763 = vsyncpa [#allocation4], 1 }
 0x334   :  { %765 = vsyncpa [#allocation4 + $0x1], 1 }
 0x335   :  { %766 = vsyncpa [#allocation7], 1 }
 0x336   :  { %767 = vsyncpa [#allocation5], 1 }
 0x337   :  { %769 = vsyncpa [#allocation5 + $0x1], 1 }
 0x338   :  { %770 = vsyncpa [#allocation11], 1 }
 0x339   :  { %772 = vsyncpa [#allocation11 + $0x1], 1 }

</bundles_post_ra>
